<compile_context>
chip_gen: v7x
topology: tpu7x:2x2x1
jax: 0.10.0
libtpu: 0.0.40
codegen_flags: <defaults>
</compile_context>

<pallas_src>
import functools
import math

import jax
import jax.numpy as jnp
from jax.experimental import pallas as pl
from jax.experimental.pallas import tpu as pltpu


def _stats_kernel(x_ref, s1_ref, s2_ref, sri_ref, *, channels, t_total, t_tile):
    """Accumulate per-channel sum(x), sum(x^2), sum(x_r*x_i) over all tiles."""
    b = pl.program_id(0)
    t = pl.program_id(1)

    @pl.when(jnp.logical_and(b == 0, t == 0))
    def _init():
        s1_ref[...] = jnp.zeros_like(s1_ref)
        s2_ref[...] = jnp.zeros_like(s2_ref)
        sri_ref[...] = jnp.zeros_like(sri_ref)

    x = x_ref[0].astype(jnp.float32)                      # (2C, T_tile)

    if t_total % t_tile != 0:
        # Partial last tile: mask out-of-bounds lanes so padding garbage
        # never pollutes the per-channel sums.
        lane = jax.lax.broadcasted_iota(jnp.int32, x.shape, 1)
        x = jnp.where(t * t_tile + lane < t_total, x, 0.0)

    # roll by C along sublanes swaps the real/imag halves: [xr;xi] -> [xi;xr]
    rolled = pltpu.roll(x, shift=channels, axis=0)

    s1_ref[...] += jnp.sum(x, axis=1, keepdims=True)
    s2_ref[...] += jnp.sum(x * x, axis=1, keepdims=True)
    sri_ref[...] += jnp.sum(x * rolled, axis=1, keepdims=True)


def _apply_kernel(x_ref, cs_ref, cc_ref, cb_ref, o_ref, *, channels):
    """out = coef_same * x + coef_cross * roll(x, C) + bias  (per channel)."""
    x = x_ref[0].astype(jnp.float32)                      # (2C, T_tile)
    rolled = pltpu.roll(x, shift=channels, axis=0)        # [xi ; xr]
    out = cs_ref[...] * x + cc_ref[...] * rolled + cb_ref[...]
    o_ref[0] = out.astype(o_ref.dtype)


def _pick_t_tile(c2, t, itemsize, max_block_bytes=2 * 1024 * 1024, max_tile=2048):
    """Pick a lane-dense T tile (multiple of 128 or the full T) that keeps the
    apply pass (~4 double-buffered blocks) under the smallest default scoped
    VMEM limit across v5e/v6e/v7x."""
    if t <= max_tile and c2 * t * itemsize <= max_block_bytes:
        return t
    cap = max(128, min(max_tile, (max_block_bytes // (c2 * itemsize)) // 128 * 128))
    # Prefer a tile that divides T exactly (no masked tail work).
    for cand in range(cap, 127, -128):
        if t % cand == 0:
            return cand
    return cap


def complex_batch_norm(x, gamma_rr, gamma_ri, gamma_ii, beta, *,
                       epsilon=1e-5, t_tile=None):
    """Training-mode ComplexBatchNormalization forward.  x: (B, 2C, T)."""
    B, C2, T = x.shape
    C = C2 // 2
    N = B * T
    itemsize = jnp.dtype(x.dtype).itemsize

    if t_tile is None:
        t_tile = _pick_t_tile(C2, T, itemsize)
    num_t = pl.cdiv(T, t_tile)

    data_spec = pl.BlockSpec((1, C2, t_tile), lambda b, t: (b, 0, t))
    acc_spec = pl.BlockSpec((C2, 1), lambda b, t: (0, 0))
    param_spec = pl.BlockSpec((C2, 1), lambda b, t: (0, 0))

    # ---------------- Pass 1: per-channel uncentred moment sums. ----------
    s1, s2, sri = pl.pallas_call(
        functools.partial(_stats_kernel, channels=C, t_total=T, t_tile=t_tile),
        grid=(B, num_t),
        in_specs=[data_spec],
        out_specs=(acc_spec, acc_spec, acc_spec),
        out_shape=(jax.ShapeDtypeStruct((C2, 1), jnp.float32),
                   jax.ShapeDtypeStruct((C2, 1), jnp.float32),
                   jax.ShapeDtypeStruct((C2, 1), jnp.float32)),
        compiler_params=pltpu.CompilerParams(
            dimension_semantics=("arbitrary", "arbitrary")),
    )(x)

    # -------- Finalize: tiny per-channel math on (C,) vectors (plain JAX). --
    s1 = s1[:, 0]
    s2 = s2[:, 0]
    inv_n = 1.0 / float(N)
    mu = s1 * inv_n                                        # (2C,)
    var = s2 * inv_n - mu * mu                             # E[x^2] - mu^2
    mu_r, mu_i = mu[:C], mu[C:]
    Vrr = var[:C] + epsilon
    Vii = var[C:] + epsilon
    Vri = sri[:C, 0] * inv_n - mu_r * mu_i

    tau = Vrr + Vii
    delta = Vrr * Vii - Vri * Vri
    s = jnp.sqrt(delta)
    tt = jnp.sqrt(tau + 2.0 * s)
    inv_st = 1.0 / (s * tt)
    Wrr = (Vii + s) * inv_st
    Wii = (Vrr + s) * inv_st
    Wri = -Vri * inv_st

    grr = gamma_rr.astype(jnp.float32)
    gri = gamma_ri.astype(jnp.float32)
    gii = gamma_ii.astype(jnp.float32)
    beta_f = beta.astype(jnp.float32)

    # Fold gamma into the whitening matrix and the mean into the bias:
    #   out_r = A_rr*xr + A_ri*xi + b_r ;  out_i = A_ir*xr + A_ii*xi + b_i
    A_rr = grr * Wrr + gri * Wri
    A_ri = grr * Wri + gri * Wii
    A_ir = gii * Wri + gri * Wrr
    A_ii = gii * Wii + gri * Wri
    b_r = beta_f[:C] - A_rr * mu_r - A_ri * mu_i
    b_i = beta_f[C:] - A_ir * mu_r - A_ii * mu_i

    coef_same = jnp.concatenate([A_rr, A_ii]).reshape(C2, 1)
    coef_cross = jnp.concatenate([A_ri, A_ir]).reshape(C2, 1)
    coef_bias = jnp.concatenate([b_r, b_i]).reshape(C2, 1)

    # ---------------- Pass 2: lane-dense elementwise apply. ----------------
    out = pl.pallas_call(
        functools.partial(_apply_kernel, channels=C),
        grid=(B, num_t),
        in_specs=[data_spec, param_spec, param_spec, param_spec],
        out_specs=data_spec,
        out_shape=jax.ShapeDtypeStruct((B, C2, T), x.dtype),
        compiler_params=pltpu.CompilerParams(
            dimension_semantics=("parallel", "parallel")),
    )(x, coef_same, coef_cross, coef_bias)

    return out


def _reference_jax(x, gamma_rr, gamma_ri, gamma_ii, beta, epsilon=1e-5):
    """Pure-JAX mirror of the PyTorch training-mode forward (for checking)."""
    B, C2, T = x.shape
    C = C2 // 2
    xp = jnp.transpose(x, (1, 0, 2)).reshape(C2, -1).astype(jnp.float32)
    mu = jnp.mean(xp, axis=1, keepdims=True)
    c = xp - mu
    cr, ci = c[:C], c[C:]
    Vrr = jnp.mean(cr * cr, axis=1, keepdims=True) + epsilon
    Vii = jnp.mean(ci * ci, axis=1, keepdims=True) + epsilon
    Vri = jnp.mean(cr * ci, axis=1, keepdims=True)
    tau = Vrr + Vii
    delta = Vrr * Vii - Vri ** 2
    s = jnp.sqrt(delta)
    t = jnp.sqrt(tau + 2 * s)
    inv_st = 1.0 / (s * t)
    Wrr, Wii, Wri = (Vii + s) * inv_st, (Vrr + s) * inv_st, -Vri * inv_st
    std_r = Wrr * cr + Wri * ci
    std_i = Wii * ci + Wri * cr
    out_r = gamma_rr[:, None] * std_r + gamma_ri[:, None] * std_i + beta[:C, None]
    out_i = gamma_ii[:, None] * std_i + gamma_ri[:, None] * std_r + beta[C:, None]
    out = jnp.concatenate([out_r, out_i], axis=0).reshape(C2, B, T)
    return jnp.transpose(out, (1, 0, 2)).astype(x.dtype)


if __name__ == "__main__":
    def _check(B, C, T, t_tile, key):
        C2 = 2 * C
        kx, kg1, kg2, kg3, kb = jax.random.split(key, 5)
        x = jax.random.normal(kx, (B, C2, T), dtype=jnp.float32)
        inv_sqrt2 = 1.0 / math.sqrt(2.0)
        gamma_rr = inv_sqrt2 + 0.1 * jax.random.normal(kg1, (C,), dtype=jnp.float32)
        gamma_ri = 0.1 * jax.random.normal(kg2, (C,), dtype=jnp.float32)
        gamma_ii = inv_sqrt2 + 0.1 * jax.random.normal(kg3, (C,), dtype=jnp.float32)
        beta = 0.1 * jax.random.normal(kb, (C2,), dtype=jnp.float32)

        fn = jax.jit(lambda xx, a, b, c, d: complex_batch_norm(
            xx, a, b, c, d, epsilon=1e-5, t_tile=t_tile))
        out = jax.block_until_ready(fn(x, gamma_rr, gamma_ri, gamma_ii, beta))

        ref = _reference_jax(x, gamma_rr, gamma_ri, gamma_ii, beta)
        assert out.shape == (B, C2, T)
        err = float(jnp.max(jnp.abs(out - ref)))
        assert jnp.allclose(out, ref, atol=1e-4, rtol=1e-4), err

    key = jax.random.PRNGKey(0)
    k1, k2 = jax.random.split(key)

    # Small shapes, single T tile (block equals the full T dim).
    _check(B=2, C=8, T=48, t_tile=None, key=k1)
    # Multi-tile path: grid (B, T//128) exercising the resident stats
    # accumulator and lane-dense 128-wide tiles.
    _check(B=2, C=4, T=512, t_tile=128, key=k2)

    print("KERNEL_OK")
</pallas_src>

<mosaic_0001>
module attributes {stable_mosaic.version = 11 : i64} {
  func.func @_stats_kernel(%arg0: i32, %arg1: i32, %arg2: memref<1x16x48xf32, #tpu.memory_space<vmem>>, %arg3: memref<16x1xf32, #tpu.memory_space<vmem>>, %arg4: memref<16x1xf32, #tpu.memory_space<vmem>>, %arg5: memref<16x1xf32, #tpu.memory_space<vmem>>) attributes {dimension_semantics = [#tpu.dimension_semantics<arbitrary>, #tpu.dimension_semantics<arbitrary>], iteration_bounds = array<i64: 2, 1>, scalar_prefetch = 0 : i64, scratch_operands = 0 : i64, tpu.core_type = #tpu.core_type<tc>, window_params = [{transform_indices = @transform_0, window_bounds = array<i64: 1, 16, 48>}, {pipeline_mode = #tpu.pipeline_mode<synchronous>, transform_indices = @transform_1, window_bounds = array<i64: 16, 1>}, {pipeline_mode = #tpu.pipeline_mode<synchronous>, transform_indices = @transform_2, window_bounds = array<i64: 16, 1>}, {pipeline_mode = #tpu.pipeline_mode<synchronous>, transform_indices = @transform_3, window_bounds = array<i64: 16, 1>}]} {
    %c0_i32 = arith.constant 0 : i32
    %0 = arith.cmpi eq, %arg0, %c0_i32 : i32
    %c0_i32_0 = arith.constant 0 : i32
    %1 = arith.cmpi eq, %arg1, %c0_i32_0 : i32
    %2 = arith.andi %0, %1 : i1
    %3 = arith.extui %2 : i1 to i32
    %c0_i32_1 = arith.constant 0 : i32
    %4 = arith.cmpi ne, %3, %c0_i32_1 : i32
    scf.if %4 {
      %cst_18 = arith.constant 0.000000e+00 : f32
      %25 = vector.broadcast %cst_18 : f32 to vector<16x1xf32>
      %c0_19 = arith.constant 0 : index
      %c0_20 = arith.constant 0 : index
      %26 = vector.load %arg3[%c0_19, %c0_20] : memref<16x1xf32, #tpu.memory_space<vmem>>, vector<16x1xf32>
      tpu.vector_store %arg3[%c0_19, %c0_20], %25 {strides = array<i32>} : memref<16x1xf32, #tpu.memory_space<vmem>>, vector<16x1xf32>,
      %cst_21 = arith.constant 0.000000e+00 : f32
      %27 = vector.broadcast %cst_21 : f32 to vector<16x1xf32>
      %c0_22 = arith.constant 0 : index
      %c0_23 = arith.constant 0 : index
      %28 = vector.load %arg4[%c0_22, %c0_23] : memref<16x1xf32, #tpu.memory_space<vmem>>, vector<16x1xf32>
      tpu.vector_store %arg4[%c0_22, %c0_23], %27 {strides = array<i32>} : memref<16x1xf32, #tpu.memory_space<vmem>>, vector<16x1xf32>,
      %cst_24 = arith.constant 0.000000e+00 : f32
      %29 = vector.broadcast %cst_24 : f32 to vector<16x1xf32>
      %c0_25 = arith.constant 0 : index
      %c0_26 = arith.constant 0 : index
      %30 = vector.load %arg5[%c0_25, %c0_26] : memref<16x1xf32, #tpu.memory_space<vmem>>, vector<16x1xf32>
      tpu.vector_store %arg5[%c0_25, %c0_26], %29 {strides = array<i32>} : memref<16x1xf32, #tpu.memory_space<vmem>>, vector<16x1xf32>,
    } else {
    }
    %c0 = arith.constant 0 : index
    %c0_2 = arith.constant 0 : index
    %c0_3 = arith.constant 0 : index
    %5 = vector.load %arg2[%c0, %c0_2, %c0_3] : memref<1x16x48xf32, #tpu.memory_space<vmem>>, vector<1x16x48xf32>
    %6 = vector.shape_cast %5 : vector<1x16x48xf32> to vector<16x48xf32>
    %c8_i32 = arith.constant 8 : i32
    %7 = tpu.dynamic_rotate %6 by %c8_i32 dim 0 : vector<16x48xf32>, i32 -> vector<16x48xf32>
    %c0_4 = arith.constant 0 : index
    %c0_5 = arith.constant 0 : index
    %8 = vector.load %arg3[%c0_4, %c0_5] : memref<16x1xf32, #tpu.memory_space<vmem>>, vector<16x1xf32>
    %cst = arith.constant dense<0.000000e+00> : vector<16xf32>
    %9 = vector.multi_reduction <add>, %6, %cst [1] : vector<16x48xf32> to vector<16xf32>
    %10 = vector.shape_cast %9 : vector<16xf32> to vector<16x1xf32>
    %11 = arith.addf %8, %10 : vector<16x1xf32>
    %c0_6 = arith.constant 0 : index
    %c0_7 = arith.constant 0 : index
    %12 = vector.load %arg3[%c0_6, %c0_7] : memref<16x1xf32, #tpu.memory_space<vmem>>, vector<16x1xf32>
    tpu.vector_store %arg3[%c0_6, %c0_7], %11 {strides = array<i32>} : memref<16x1xf32, #tpu.memory_space<vmem>>, vector<16x1xf32>,
    %c0_8 = arith.constant 0 : index
    %c0_9 = arith.constant 0 : index
    %13 = vector.load %arg4[%c0_8, %c0_9] : memref<16x1xf32, #tpu.memory_space<vmem>>, vector<16x1xf32>
    %14 = arith.mulf %6, %6 : vector<16x48xf32>
    %cst_10 = arith.constant dense<0.000000e+00> : vector<16xf32>
    %15 = vector.multi_reduction <add>, %14, %cst_10 [1] : vector<16x48xf32> to vector<16xf32>
    %16 = vector.shape_cast %15 : vector<16xf32> to vector<16x1xf32>
    %17 = arith.addf %13, %16 : vector<16x1xf32>
    %c0_11 = arith.constant 0 : index
    %c0_12 = arith.constant 0 : index
    %18 = vector.load %arg4[%c0_11, %c0_12] : memref<16x1xf32, #tpu.memory_space<vmem>>, vector<16x1xf32>
    tpu.vector_store %arg4[%c0_11, %c0_12], %17 {strides = array<i32>} : memref<16x1xf32, #tpu.memory_space<vmem>>, vector<16x1xf32>,
    %c0_13 = arith.constant 0 : index
    %c0_14 = arith.constant 0 : index
    %19 = vector.load %arg5[%c0_13, %c0_14] : memref<16x1xf32, #tpu.memory_space<vmem>>, vector<16x1xf32>
    %20 = arith.mulf %6, %7 : vector<16x48xf32>
    %cst_15 = arith.constant dense<0.000000e+00> : vector<16xf32>
    %21 = vector.multi_reduction <add>, %20, %cst_15 [1] : vector<16x48xf32> to vector<16xf32>
    %22 = vector.shape_cast %21 : vector<16xf32> to vector<16x1xf32>
    %23 = arith.addf %19, %22 : vector<16x1xf32>
    %c0_16 = arith.constant 0 : index
    %c0_17 = arith.constant 0 : index
    %24 = vector.load %arg5[%c0_16, %c0_17] : memref<16x1xf32, #tpu.memory_space<vmem>>, vector<16x1xf32>
    tpu.vector_store %arg5[%c0_16, %c0_17], %23 {strides = array<i32>} : memref<16x1xf32, #tpu.memory_space<vmem>>, vector<16x1xf32>,
    return
  }
  func.func @transform_0(%arg0: i32, %arg1: i32) -> (i32, i32, i32) {
    %c0_i32 = arith.constant 0 : i32
    %c0_i32_0 = arith.constant 0 : i32
    return %arg0, %c0_i32, %arg1 : i32, i32, i32
  }
  func.func @transform_1(%arg0: i32, %arg1: i32) -> (i32, i32) {
    %c0_i32 = arith.constant 0 : i32
    %c0_i32_0 = arith.constant 0 : i32
    %c0_i32_1 = arith.constant 0 : i32
    return %c0_i32, %c0_i32_0 : i32, i32
  }
  func.func @transform_2(%arg0: i32, %arg1: i32) -> (i32, i32) {
    %c0_i32 = arith.constant 0 : i32
    %c0_i32_0 = arith.constant 0 : i32
    %c0_i32_1 = arith.constant 0 : i32
    return %c0_i32, %c0_i32_0 : i32, i32
  }
  func.func @transform_3(%arg0: i32, %arg1: i32) -> (i32, i32) {
    %c0_i32 = arith.constant 0 : i32
    %c0_i32_0 = arith.constant 0 : i32
    %c0_i32_1 = arith.constant 0 : i32
    return %c0_i32, %c0_i32_0 : i32, i32
  }
}

module attributes {stable_mosaic.version = 11 : i64} {
  func.func @_apply_kernel(%arg0: i32, %arg1: i32, %arg2: memref<1x16x48xf32, #tpu.memory_space<vmem>>, %arg3: memref<16x1xf32, #tpu.memory_space<vmem>>, %arg4: memref<16x1xf32, #tpu.memory_space<vmem>>, %arg5: memref<16x1xf32, #tpu.memory_space<vmem>>, %arg6: memref<1x16x48xf32, #tpu.memory_space<vmem>>) attributes {dimension_semantics = [#tpu.dimension_semantics<parallel>, #tpu.dimension_semantics<parallel>], iteration_bounds = array<i64: 2, 1>, scalar_prefetch = 0 : i64, scratch_operands = 0 : i64, tpu.core_type = #tpu.core_type<tc>, window_params = [{transform_indices = @transform_0, window_bounds = array<i64: 1, 16, 48>}, {pipeline_mode = #tpu.pipeline_mode<synchronous>, transform_indices = @transform_1, window_bounds = array<i64: 16, 1>}, {pipeline_mode = #tpu.pipeline_mode<synchronous>, transform_indices = @transform_2, window_bounds = array<i64: 16, 1>}, {pipeline_mode = #tpu.pipeline_mode<synchronous>, transform_indices = @transform_3, window_bounds = array<i64: 16, 1>}, {transform_indices = @transform_4, window_bounds = array<i64: 1, 16, 48>}]} {
    %c0 = arith.constant 0 : index
    %c0_0 = arith.constant 0 : index
    %c0_1 = arith.constant 0 : index
    %0 = vector.load %arg2[%c0, %c0_0, %c0_1] : memref<1x16x48xf32, #tpu.memory_space<vmem>>, vector<1x16x48xf32>
    %1 = vector.shape_cast %0 : vector<1x16x48xf32> to vector<16x48xf32>
    %c8_i32 = arith.constant 8 : i32
    %2 = tpu.dynamic_rotate %1 by %c8_i32 dim 0 : vector<16x48xf32>, i32 -> vector<16x48xf32>
    %c0_2 = arith.constant 0 : index
    %c0_3 = arith.constant 0 : index
    %3 = vector.load %arg3[%c0_2, %c0_3] : memref<16x1xf32, #tpu.memory_space<vmem>>, vector<16x1xf32>
    %4 = vector.broadcast %3 : vector<16x1xf32> to vector<16x48xf32>
    %5 = arith.mulf %4, %1 : vector<16x48xf32>
    %c0_4 = arith.constant 0 : index
    %c0_5 = arith.constant 0 : index
    %6 = vector.load %arg4[%c0_4, %c0_5] : memref<16x1xf32, #tpu.memory_space<vmem>>, vector<16x1xf32>
    %7 = vector.broadcast %6 : vector<16x1xf32> to vector<16x48xf32>
    %8 = arith.mulf %7, %2 : vector<16x48xf32>
    %9 = arith.addf %5, %8 : vector<16x48xf32>
    %c0_6 = arith.constant 0 : index
    %c0_7 = arith.constant 0 : index
    %10 = vector.load %arg5[%c0_6, %c0_7] : memref<16x1xf32, #tpu.memory_space<vmem>>, vector<16x1xf32>
    %11 = vector.broadcast %10 : vector<16x1xf32> to vector<16x48xf32>
    %12 = arith.addf %9, %11 : vector<16x48xf32>
    %c0_8 = arith.constant 0 : index
    %c0_9 = arith.constant 0 : index
    %c0_10 = arith.constant 0 : index
    %13 = vector.load %arg6[%c0_8, %c0_9, %c0_10] : memref<1x16x48xf32, #tpu.memory_space<vmem>>, vector<1x16x48xf32>
    %14 = vector.shape_cast %13 : vector<1x16x48xf32> to vector<16x48xf32>
    %15 = vector.shape_cast %12 : vector<16x48xf32> to vector<1x16x48xf32>
    tpu.vector_store %arg6[%c0_8, %c0_9, %c0_10], %15 {strides = array<i32>} : memref<1x16x48xf32, #tpu.memory_space<vmem>>, vector<1x16x48xf32>,
    return
  }
  func.func @transform_0(%arg0: i32, %arg1: i32) -> (i32, i32, i32) {
    %c0_i32 = arith.constant 0 : i32
    %c0_i32_0 = arith.constant 0 : i32
    return %arg0, %c0_i32, %arg1 : i32, i32, i32
  }
  func.func @transform_1(%arg0: i32, %arg1: i32) -> (i32, i32) {
    %c0_i32 = arith.constant 0 : i32
    %c0_i32_0 = arith.constant 0 : i32
    %c0_i32_1 = arith.constant 0 : i32
    return %c0_i32, %c0_i32_0 : i32, i32
  }
  func.func @transform_2(%arg0: i32, %arg1: i32) -> (i32, i32) {
    %c0_i32 = arith.constant 0 : i32
    %c0_i32_0 = arith.constant 0 : i32
    %c0_i32_1 = arith.constant 0 : i32
    return %c0_i32, %c0_i32_0 : i32, i32
  }
  func.func @transform_3(%arg0: i32, %arg1: i32) -> (i32, i32) {
    %c0_i32 = arith.constant 0 : i32
    %c0_i32_0 = arith.constant 0 : i32
    %c0_i32_1 = arith.constant 0 : i32
    return %c0_i32, %c0_i32_0 : i32, i32
  }
  func.func @transform_4(%arg0: i32, %arg1: i32) -> (i32, i32, i32) {
    %c0_i32 = arith.constant 0 : i32
    %c0_i32_0 = arith.constant 0 : i32
    return %arg0, %c0_i32, %arg1 : i32, i32, i32
  }
}

</mosaic_0001>

<bundles_post_ra>
// kernel: _lambda_.2
= control target key start
LH: loop header
LB: loop body
LE: loop exit
PB: predicated region body
PF: predicated region fallthrough
CT: control target
= control target key end

     0   :  { %9 = vsyncpa [#allocation3], 0  ;;  %s658_s0 = inlined_call_operand.hbm [shape: f32[2,16,48], index: 0, kind: input, shape index: {}]   ;;  %s659_s1 = inlined_call_operand.vmem [shape: f32[16,1], index: 1, kind: output, shape index: {0}]   ;;  %s660_s2 = inlined_call_operand.vmem [shape: f32[16,1], index: 2, kind: output, shape index: {1}]   ;;  %s661_s3 = inlined_call_operand.vmem [shape: f32[16,1], index: 3, kind: output, shape index: {2}]  }
   0x1   :  { %11 = vsyncpa [#allocation3 + $0x1], 0  ;;  %s478_s12 = smov 0   ;;  %s480_s13 = smov 0  }
   0x2   :  { %s482_s14 = smov 0   ;;  %s484_s15 = smov 0  }
   0x3   :  { %s486_s16 = smov 0   ;;  %s488_s17 = smov 0  }
   0x4 LB: > { %s301_s18 = sadd.s32 4294967295, %s452_s17   ;;  %s29_s19 = sadd.s32 1, %s448_s16  ;;  %s452_s17 = sphi %s488_s17, %s17_s17   ;;  %s448_s16 = sphi %s486_s16, %s669_s16   ;;  %s444_s15 = sphi %s484_s15, %s668_s15   ;;  %s440_s14 = sphi %s482_s14, %s667_s14   ;;  %s436_s13 = sphi %s480_s13, %s666_s13   ;;  %s432_s12 = sphi %s478_s12, %s665_s12  }
   0x5   : > { %p31_p0 = scmp.ge.s32.totalorder %s29_s19, 2  ;;  %s38_s20 = sadd.s32 1, %s440_s14 }
   0x6   : > { %p45_p1 = scmp.ne.s32.totalorder %s440_s14, %s436_s13  ;;  %p46_p2 = scmp.eq.s32.totalorder %s452_s17, 0 }
   0x7   : > { %s671_s19 = smov (%p31_p0, %s29_s19), 0  ;;  %p51_p4 = scmp.ne.s32.totalorder %s436_s13, %s432_s12 }
   0x8   : > { %p514_p3 = por %p46_p2, %p45_p1  ;;  %s33_s22 = ssub.s32 %s448_s16, %s671_s19 }
   0x9   : > { %p52_p5 = scmp.eq.s32.totalorder %s301_s18, 0  ;;  %p36_p6 = scmp.eq.s32.totalorder %s33_s22, 0 }
   0xa   : > { %p320_p8 = scmp.lt.s32.totalorder %s452_s17, 2  ;;  %s138_s25 = sand.u32 1, %s440_s14  }
   0xb   : > { %p521_p7 = por %p52_p5, %p51_p4  ;;  %s312_s26 = sshll.u32 %s448_s16, 8 }
   0xc   : > { %s527_s24 = scalar_select %p36_p6, %s440_s14, %s38_s20  }
   0xd   : > { %s304_s27 = sshll.u32 %s138_s25, 4  ;;  %s534_s30 = scalar_lea.hbm %s658_s0, %s312_s26 }
   0xe   : > { %s142_s4 = scalar_lea.vmem [#allocation2], %s304_s27  ;;  %p538_p9 = pnand %p320_p8, %p514_p3 }
   0xf   : > { %s150_s5 = sshll.u32 %s142_s4, 4  ;;  %s544_s7 = scalar_lea.sflag [#allocation3], %s138_s25  ;;  %s542_s5 = int_to_ptr.vmem [resolvable:$true] %s150_s5 }
  0x10   : > { %s372_s8 = scalar_lea.hbm %s534_s30, 256  ;;  %p374_p11 = pneg %p538_p9 }
  0x11   : > { %p373_p10 = scmp.ne.s32.totalorder %s534_s30, %s372_s8  ;;  %s377_s11 = scalar_lea.hbm %s658_s0, 512 }
  0x12   : > { %p378_p0 = scmp.lt.u32.totalorder %s534_s30, %s658_s0  ;;  %p379_p1 = scmp.lt.u32.totalorder %s377_s11, %s372_s8 }
  0x13   : > { %p375_p12 = pnand %p374_p11, %p373_p10  ;;  %p381_p3 = scmp.lt.u32.totalorder %s372_s8, %s534_s30 }
  0x14   : > { %p380_p2 = por %p379_p1, %p378_p0 }
  0x15   : > { %p376_p13 = pneg %p375_p12 }
  0x16   : > { %p382_p4 = por %p381_p3, %p380_p2 }
  0x18   : > { %p383_p5 = pnand %p382_p4, %p376_p13 }
  0x1a   : > { %386 = shalt.err (!%p383_p5)
}
  0x1b   : > { %s387_s20 = scalar_lea.vmem %s542_s5, 256  ;;  %s454_s21 = smov [#allocation2]  }
  0x1c   : > { %p388_p6 = scmp.ne.s32.totalorder %s542_s5, %s387_s20  ;;  %s392_s22 = sshll.u32 %s454_s21, 4  ;;  %s393_s22 = int_to_ptr.vmem [resolvable:$false] %s392_s22 }
  0x1d   : > { %s394_s25 = scalar_lea.vmem %s393_s22, 512  ;;  %p395_p12 = scmp.lt.s32.totalorder %s542_s5, %s393_s22 }
  0x1e   : > { %p390_p8 = pnand %p388_p6, %p374_p11  ;;  %p396_p0 = scmp.lt.s32.totalorder %s394_s25, %s387_s20 }
  0x20   : > { %p391_p10 = pneg %p390_p8  ;;  %p397_p1 = por %p396_p0, %p395_p12 }
  0x22   : > { %p398_p2 = pnand %p397_p1, %p391_p10 }
  0x24   : > { %401 = shalt.err (!%p398_p2)
}
  0x25   : > { %s455_s26 = smov 128   ;;  %s456_s27 = smov 8  }
  0x26   : > { %319 = dma.hbm_to_vmem [thread:$0]  (!%p538_p9), %s534_s30, 256, %s542_s5, %s544_s7, %s455_s26, %s455_s26, %s456_s27  }
  0x27   : > { %p307_p11 = scmp.ge.s32.totalorder %s452_s17, 1  ;;  %p158_p13 = scmp.lt.s32.totalorder %s452_s17, 3 }
  0x29   : > { %p159_p3 = pnand %p307_p11, %p158_p13 }
  0x2a   : > { %s164_s28 = sand.u32 (!%p159_p3), 1, %s436_s13  }
  0x2b   : > { %162 = sbr.rel (%p159_p3) target bundleno = 215 (0xd7), region = 24  ;;  %s308_s29 = sshll.u32 (!%p159_p3), %s164_s28, 4 }
  0x2c   : > { %s165_s4 = scalar_lea.sflag (!%p159_p3), [#allocation3], %s164_s28  ;;  %s168_s8 = scalar_lea.vmem (!%p159_p3), [#allocation2], %s308_s29 }
  0x32   : > { %427 = dma.done.wait (%p521_p7), %s165_s4, 256  }
  0x33   : > { %429 = vsyncadd (%p521_p7), %s165_s4, 4294967040  ;;  %p186_p4 = scmp.eq.s32.totalorder %s444_s15, 0 }
  0x34   : > { %vm192_vm0 = vcmask (%p186_p4), 7168   ;;  %v457_v0 = vmov (%p186_p4), 0.0  }
  0x35   : > { %191 = sbr.rel (!%p186_p4) target bundleno = 60 (0x3c), region = 32  ;;  %193 = vst.msk [vmem:[%s659_s1] sm:$0xff] (%p186_p4), %vm192_vm0, %v457_v0  ;;  %194 = vst.msk [vmem:[%s659_s1 + $0x8] sm:$0xff] (%p186_p4), %vm192_vm0, %v457_v0 }
  0x36   : > { %195 = vst.msk [vmem:[%s660_s2] sm:$0xff] (%p186_p4), %vm192_vm0, %v457_v0  ;;  %196 = vst.msk [vmem:[%s660_s2 + $0x8] sm:$0xff] (%p186_p4), %vm192_vm0, %v457_v0 }
  0x37   : > { %197 = vst.msk [vmem:[%s661_s3] sm:$0xff] (%p186_p4), %vm192_vm0, %v457_v0  ;;  %198 = vst.msk [vmem:[%s661_s3 + $0x8] sm:$0xff] (%p186_p4), %vm192_vm0, %v457_v0 }
  0x3c PF: > { %v199_v1 = vld [vmem:[%s168_s8] sm:$0xff]  ;;  %vm203_vm1 = vcmask 392192   ;;  %v200_v2 = vld [vmem:[%s168_s8 + $0x8] sm:$0xff]  ;;  %vm212_vm2 = vcmask 7168  }
  0x3d   : > { %v204_v3 = vsel %vm203_vm1, %v199_v1, 0.0  ;;  %v217_v4 = vmul.f32 %v199_v1, %v199_v1  ;;  %v218_v5 = vmul.f32 %v200_v2, %v200_v2  ;;  %v207_v7 = vsel %vm203_vm1, %v200_v2, 0.0  ;;  %v201_v11 = vld [vmem:[%s659_s1] sm:$0xff]  ;;  %v202_v16 = vld [vmem:[%s659_s1 + $0x8] sm:$0xff] }
  0x3e   : > { %205 = vadd.xlane.f32.xlu0 %v204_v3  ;;  %v231_v8 = vmul.f32 %v200_v2, %v199_v1  ;;  %v215_v13 = vld [vmem:[%s660_s2] sm:$0xff]  ;;  %v216_v19 = vld [vmem:[%s660_s2 + $0x8] sm:$0xff] }
  0x3f   : > { %v219_v6 = vsel %vm203_vm1, %v217_v4, 0.0  ;;  %v222_v9 = vsel %vm203_vm1, %v218_v5, 0.0  ;;  %v229_v22 = vld [vmem:[%s661_s3] sm:$0xff]  ;;  %v230_v23 = vld [vmem:[%s661_s3 + $0x8] sm:$0xff] }
  0x40   : > { %220 = vadd.xlane.f32.xlu1 %v219_v6  ;;  %v232_v10 = vsel %vm203_vm1, %v231_v8, 0.0 }
  0x42   : > { %208 = vadd.xlane.f32.xlu0 %v207_v7 }
  0x44   : > { %223 = vadd.xlane.f32.xlu1 %v222_v9 }
  0x46   : > { %233 = vadd.xlane.f32.xlu0 %v232_v10 }
  0xcb   : > { %v206_v12 = vpop.xlane.xlu0 %205 }
  0xcc   : > { %v210_v14 = vadd.f32 %v206_v12, %v201_v11 }
  0xcd   : > { %v221_v15 = vpop.xlane.xlu1 %220 }
  0xce   : > { %213 = vst.msk [vmem:[%s659_s1] sm:$0xff] %vm212_vm2, %v210_v14  ;;  %v225_v17 = vadd.f32 %v221_v15, %v215_v13 }
  0xcf   : > { %v209_v18 = vpop.xlane.xlu0 %208 }
  0xd0   : > { %227 = vst.msk [vmem:[%s660_s2] sm:$0xff] %vm212_vm2, %v225_v17  ;;  %v211_v20 = vadd.f32 %v209_v18, %v202_v16 }
  0xd1   : > { %v224_v21 = vpop.xlane.xlu1 %223 }
  0xd2   : > { %214 = vst.msk [vmem:[%s659_s1 + $0x8] sm:$0xff] %vm212_vm2, %v211_v20  ;;  %v226_v24 = vadd.f32 %v224_v21, %v216_v19 }
  0xd3   : > { %v234_v25 = vpop.xlane.xlu0 %233 }
  0xd4   : > { %228 = vst.msk [vmem:[%s660_s2 + $0x8] sm:$0xff] %vm212_vm2, %v226_v24  ;;  %v235_v26 = vadd.f32 %v234_v25, %v229_v22  ;;  %v236_v27 = vadd.f32 %v234_v25, %v230_v23 }
  0xd6   : > { %237 = vst.msk [vmem:[%s661_s3] sm:$0xff] %vm212_vm2, %v235_v26  ;;  %238 = vst.msk [vmem:[%s661_s3 + $0x8] sm:$0xff] %vm212_vm2, %v236_v27 }
  0xd7 PF: > { %s17_s17 = sadd.s32 1, %s452_s17   ;;  %s665_s12 = smov %s436_s13 }
  0xd8   : > { %p14_p7 = scmp.ge.s32.totalorder %s17_s17, 4   ;;  %s666_s13 = smov %s440_s14 }
  0xd9   : > { %s667_s14 = smov %s527_s24  ;;  %s668_s15 = smov %s448_s16 }
  0xda   : > { %s669_s16 = smov %s671_s19  ;;  %16 = sbr.rel (!%p14_p7) target bundleno = 4 (0x4), region = 80 }
  0xe1   :  { %262 = vsyncpa [#allocation3], 1 }
  0xe2   :  { %264 = vsyncpa [#allocation3 + $0x1], 1 }

// kernel: _lambda_.3
= control target key start
LH: loop header
LB: loop body
LE: loop exit
PB: predicated region body
PF: predicated region fallthrough
CT: control target
= control target key end

     0   :  { %9 = vsyncpa [#allocation3], 0  ;;  %s680_s0 = inlined_call_operand.vmem [shape: f32[2,16,48], index: 0, kind: input, shape index: {}]   ;;  %s681_s1 = inlined_call_operand.vmem [shape: f32[16,1], index: 1, kind: input, shape index: {}]   ;;  %s682_s2 = inlined_call_operand.vmem [shape: f32[16,1], index: 2, kind: input, shape index: {}]   ;;  %s683_s3 = inlined_call_operand.vmem [shape: f32[16,1], index: 3, kind: input, shape index: {}]   ;;  %s684_s4 = inlined_call_operand.hbm [shape: f32[2,16,48], index: 4, kind: output, shape index: {}]  }
   0x1   :  { %11 = vsyncpa [#allocation3 + $0x1], 0  ;;  %s547_s15 = smov 0   ;;  %s549_s16 = smov 0  }
   0x2   :  { %s551_s17 = smov 0   ;;  %s553_s18 = smov 0  }
   0x3   :  { %s555_s19 = smov 0   ;;  %s557_s20 = smov 0  }
   0x4 LB: > { %s363_s21 = sadd.s32 4294967295, %s516_s20   ;;  %s364_s22 = sadd.s32 4294967294, %s516_s20   ;;  %s516_s20 = sphi %s557_s20, %s17_s20   ;;  %s512_s19 = sphi %s555_s19, %s691_s19   ;;  %s508_s18 = sphi %s553_s18, %s690_s18   ;;  %s504_s17 = sphi %s551_s17, %s689_s17   ;;  %s500_s16 = sphi %s549_s16, %s688_s16   ;;  %s496_s15 = sphi %s547_s15, %s687_s15  }
   0x5   : > { %s29_s23 = sadd.s32 1, %s512_s19  ;;  %s129_s24 = sadd.s32 1, %s504_s17 }
   0x6   : > { %p31_p0 = scmp.ge.s32.totalorder %s29_s23, 2  ;;  %p139_p1 = scmp.ne.s32.totalorder %s504_s17, %s500_s16 }
   0x7   : > { %p140_p2 = scmp.eq.s32.totalorder %s363_s21, 1  ;;  %p145_p3 = scmp.ne.s32.totalorder %s500_s16, %s496_s15 }
   0x8   : > { %s693_s23 = smov (%p31_p0, %s29_s23), 0  ;;  %p146_p5 = scmp.eq.s32.totalorder %s364_s22, 1 }
   0x9   : > { %p587_p4 = por %p140_p2, %p139_p1  ;;  %s124_s26 = ssub.s32 %s512_s19, %s693_s23 }
   0xa   : > { %p367_p6 = scmp.ge.s32.totalorder %s516_s20, 1  ;;  %p127_p7 = scmp.eq.s32.totalorder %s124_s26, 0 }
   0xb   : > { %p594_p8 = por %p146_p5, %p145_p3  ;;  %p184_p9 = scmp.lt.s32.totalorder %s516_s20, 3 }
   0xc   : > { %s600_s28 = scalar_select %p127_p7, %s504_s17, %s129_s24  }
   0xd   : > { %p185_p10 = pnand %p367_p6, %p184_p9 }
   0xe   : > { %v237_v0 = vld [vmem:[%s682_s2] sm:$0xff] (!%p185_p10)  ;;  %v518_v2 = vmov (!%p185_p10), 0   ;;  %v238_v3 = vld [vmem:[%s682_s2 + $0x8] sm:$0xff] (!%p185_p10)  ;;  %p213_p11 = scmp.lt.s32.totalorder (!%p185_p10), %s508_s18, 1  ;;  %s210_s24 = sand.u32 (!%p185_p10), 1, %s500_s16   ;;  %vm267_vm0 = vcmask (!%p185_p10), 392192  }
   0xf   : > { %188 = sbr.rel (%p185_p10) target bundleno = 169 (0xa9), region = 36  ;;  %v223_v1 = vld [vmem:[%s681_s1] sm:$0xff] (!%p185_p10)  ;;  %437 = vset.pattern.permute.xlu1 (!%p185_p10), %v518_v2  ;;  %436 = vset.pattern.permute.xlu0 (!%p185_p10), %v518_v2  ;;  %v224_v4 = vld [vmem:[%s681_s1 + $0x8] sm:$0xff] (!%p185_p10)  ;;  %s368_s5 = sshll.u32 (!%p185_p10), %s210_s24, 4 }
  0x10   : > { %241 = vperm.xlu1 (!%p185_p10), %437, %v237_v0   ;;  %227 = vperm.xlu0 (!%p185_p10), %436, %v223_v1   ;;  %v254_v5 = vld [vmem:[%s683_s3 + $0x8] sm:$0xff] (!%p185_p10)  ;;  %v253_v6 = vld [vmem:[%s683_s3] sm:$0xff] (!%p185_p10)  ;;  %s212_s6 = scalar_lea.vmem (!%p185_p10), [#allocation2], %s368_s5  ;;  %s377_s8 = sshll.u32 (!%p185_p10), %s508_s18, 8 }
  0x11   : > { %s285_s7 = sshll.u32 (!%p185_p10), %s212_s6, 4  ;;  %s632_s11 = scalar_lea.hbm (!%p185_p10), %s684_s4, %s377_s8  ;;  %s627_s7 = int_to_ptr.vmem [resolvable:$true] %s285_s7 }
  0x12   : > { %s438_s12 = scalar_lea.vmem (!%p185_p10), %s627_s7, 256  ;;  %s519_s13 = smov (!%p185_p10), [#allocation2]  }
  0x13   : > { %p439_p12 = scmp.ne.s32.totalorder (!%p185_p10), %s627_s7, %s438_s12  ;;  %s442_s14 = sshll.u32 (!%p185_p10), %s519_s13, 4  ;;  %s443_s14 = int_to_ptr.vmem [resolvable:$false] %s442_s14 }
  0x14   : > { %246 = vperm.xlu1 (!%p185_p10), %437, %v238_v3   ;;  %232 = vperm.xlu0 (!%p185_p10), %436, %v224_v4   ;;  %p445_p1 = scmp.lt.s32.totalorder (!%p185_p10), %s627_s7, %s443_s14 }
  0x15   : > { %p440_p13 = pnand (!%p185_p10), %p439_p12, %p587_p4 }
  0x16   : > { %s214_s21 = scalar_select %p213_p11, %s508_s18, 1 }
  0x17   : > { %s634_s18 = scalar_lea.sflag [#allocation3], %s210_s24  ;;  %p441_p0 = pneg %p440_p13 }
  0x18   : > { %262 = vperm.xlu1 %437, %v254_v5   ;;  %257 = vperm.xlu0 %436, %v253_v6   ;;  %s376_s22 = sshll.u32 %s214_s21, 4  ;;  %s444_s21 = scalar_lea.vmem %s443_s14, 512 }
  0x19   : > { %s220_s30 = scalar_lea.vmem %s680_s0, %s376_s22  ;;  %p446_p2 = scmp.lt.s32.totalorder %s444_s21, %s438_s12 }
  0x1a   : > { %v222_v8 = vld [vmem:[%s220_s30 + $0x8] sm:$0xff]  ;;  %v221_v10 = vld [vmem:[%s220_s30] sm:$0xff] }
  0x1b   : > { %p447_p3 = por %p446_p2, %p445_p1 }
  0x1d   : > { %p448_p5 = pnand %p447_p3, %p441_p0 }
  0x8f   : > { %v242_v7 = vpop.permute.xlu1 %241  ;;  %v228_v9 = vpop.permute.xlu0 %227 }
  0x90   : > { %v249_v11 = vmul.f32 %v242_v7, %v222_v8  ;;  %v235_v12 = vmul.f32 %v228_v9, %v221_v10 }
  0x92   : > { %v251_v18 = vadd.f32 %v249_v11, %v235_v12 }
  0x93   : > { %v247_v13 = vpop.permute.xlu1 %246  ;;  %v233_v14 = vpop.permute.xlu0 %232 }
  0x94   : > { %v250_v15 = vmul.f32 %v247_v13, %v221_v10  ;;  %v236_v16 = vmul.f32 %v233_v14, %v222_v8 }
  0x96   : > { %v252_v17 = vadd.f32 %v250_v15, %v236_v16 }
  0x97   : > { %v263_v19 = vpop.permute.xlu1 %262  ;;  %v258_v20 = vpop.permute.xlu0 %257 }
  0x98   : > { %v266_v21 = vadd.f32 %v263_v19, %v252_v17  ;;  %v265_v22 = vadd.f32 %v258_v20, %v251_v18 }
  0x9a   : > { %269 = vst.msk [vmem:[%s212_s6 + $0x8] sm:$0xff] %vm267_vm0, %v266_v21  ;;  %268 = vst.msk [vmem:[%s212_s6] sm:$0xff] %vm267_vm0, %v265_v22 }
  0x9b   : > { %451 = shalt.err (!%p448_p5)
}
  0x9c   : > { %s452_s22 = scalar_lea.hbm %s632_s11, 256  ;;  %s456_s29 = scalar_lea.hbm %s684_s4, 512 }
  0x9d   : > { %p453_p6 = scmp.ne.s32.totalorder %s632_s11, %s452_s22  ;;  %p457_p10 = scmp.lt.u32.totalorder %s632_s11, %s684_s4 }
  0x9e   : > { %p458_p11 = scmp.lt.u32.totalorder %s456_s29, %s452_s22  ;;  %p460_p13 = scmp.lt.u32.totalorder %s452_s22, %s632_s11 }
  0x9f   : > { %p454_p7 = pnand %p453_p6, %p587_p4 }
  0xa0   : > { %p459_p12 = por %p458_p11, %p457_p10 }
  0xa1   : > { %p455_p9 = pneg %p454_p7 }
  0xa2   : > { %p461_p0 = por %p460_p13, %p459_p12 }
  0xa4   : > { %p462_p1 = pnand %p461_p0, %p455_p9 }
  0xa6   : > { %465 = shalt.err (!%p462_p1)
}
  0xa7   : > { %s520_s6 = smov 128   ;;  %s521_s8 = smov 8  }
  0xa8   : > { %378 = dma.vmem_to_hbm [thread:$0]  (%p587_p4), %s627_s7, 256, %s632_s11, %s634_s18, %s520_s6, %s520_s6, %s521_s8  }
  0xa9 PF: > { %p384_p2 = scmp.ge.s32.totalorder %s516_s20, 2  ;;  %s300_s9 = sand.u32 1, %s496_s15  }
  0xaa   : > { %s301_s10 = scalar_lea.sflag [#allocation3], %s300_s9 }
  0xab   : > { %p381_p3 = pnand %p384_p2, %p594_p8 }
  0xad   : > { %491 = dma.done.wait (!%p381_p3), %s301_s10, 256  }
  0xae   : > { %493 = vsyncadd (!%p381_p3), %s301_s10, 4294967040  ;;  %s17_s20 = sadd.s32 1, %s516_s20   ;;  %s687_s15 = smov %s500_s16 }
  0xaf   : > { %p14_p5 = scmp.ge.s32.totalorder %s17_s20, 4   ;;  %s688_s16 = smov %s504_s17 }
  0xb0   : > { %s689_s17 = smov %s600_s28  ;;  %s690_s18 = smov %s512_s19 }
  0xb1   : > { %s691_s19 = smov %s693_s23  ;;  %16 = sbr.rel (!%p14_p5) target bundleno = 4 (0x4), region = 71 }
  0xb8   :  { %306 = vsyncpa [#allocation3], 1 }
  0xb9   :  { %308 = vsyncpa [#allocation3 + $0x1], 1 }

</bundles_post_ra>
